<compile_context>
chip_gen: v5e
topology: v5e:2x2
jax: 0.10.0
libtpu: 0.0.40
codegen_flags: <defaults>
</compile_context>

<pallas_src>
import jax
import jax.numpy as jnp
from jax.experimental import pallas as pl
from jax.experimental.pallas import tpu as pltpu


def _round_up(x, m):
    return ((x + m - 1) // m) * m


def _cdiv(a, b):
    return (a + b - 1) // b


def _vmem_capacity_bytes():
    # Per-core VMEM: 128 MiB on v5e/v6e, 64 MiB on v7x. Conservative fallback.
    try:
        return int(pltpu.get_tpu_info().vmem_capacity_bytes)
    except Exception:
        return 64 * 1024 * 1024


def mlp_kernel(x_ref, w1_ref, b1_ref, w2_ref, b2_ref, o_ref):
    # fc1: MXU matmul with f32 accumulation; bias + ReLU stay in f32.
    h = jnp.dot(x_ref[...], w1_ref[...], preferred_element_type=jnp.float32)
    h = jnp.maximum(h + b1_ref[...], 0.0)
    # fc2: cast activations to the weight dtype (bf16 fast path), f32 accumulate.
    h = h.astype(w2_ref.dtype)
    o = jnp.dot(h, w2_ref[...], preferred_element_type=jnp.float32)
    o = jnp.maximum(o + b2_ref[...], 0.0)
    o_ref[...] = o.astype(o_ref.dtype)


def prepare_params(w1, b1, w2, b2, *, compute_dtype=jnp.float32):
    """One-time parameter prep (hoisted out of the per-call forward path).

    Pads the hidden dim to a multiple of 128 so the fc1 output / fc2 input are
    lane-dense, and casts weights to `compute_dtype`. Padded hidden columns are
    zero so ReLU keeps them at exactly 0 and they contribute nothing to fc2.
    Biases stay f32 (the epilogue runs in f32 on all generations).

    w1: (input_dim, hidden), w2: (hidden, output_dim)  -- i.e. transposed
    relative to PyTorch's (out_features, in_features) weight layout.
    """
    in_dim, hid_dim = w1.shape
    out_dim = w2.shape[1]
    hid_p = _round_up(hid_dim, 128)

    w1p = jnp.zeros((in_dim, hid_p), compute_dtype).at[:, :hid_dim].set(
        w1.astype(compute_dtype))
    b1p = jnp.zeros((1, hid_p), jnp.float32).at[:, :hid_dim].set(
        jnp.reshape(b1, (1, hid_dim)).astype(jnp.float32))
    w2p = jnp.zeros((hid_p, out_dim), compute_dtype).at[:hid_dim, :].set(
        w2.astype(compute_dtype))
    b2p = jnp.reshape(b2, (1, out_dim)).astype(jnp.float32)
    return w1p, b1p, w2p, b2p


def class_model_forward(x, params, *, tile_m=None):
    """ReLU(ReLU(x @ W1 + b1) @ W2 + b2) using pre-prepared params."""
    w1p, b1p, w2p, b2p = params
    out_dtype = x.dtype
    compute_dtype = w1p.dtype

    B, in_dim = x.shape
    assert in_dim == w1p.shape[0]
    hid_p = w1p.shape[1]
    out_dim = w2p.shape[1]

    cbytes = jnp.dtype(compute_dtype).itemsize
    obytes = jnp.dtype(out_dtype).itemsize

    # Generation-aware budgets.
    vmem_cap = _vmem_capacity_bytes()
    small_vmem = vmem_cap <= 64 * 1024 * 1024          # v7x-class part
    vmem_limit = min(vmem_cap * 3 // 4, 96 * 1024 * 1024)

    # Sublane alignment: sub-32-bit dtypes pack rows in pairs -> 16-row tiles.
    align = 8 if cbytes >= 4 else 16

    if tile_m is None:
        # Cap tile_m so double-buffered x/out tiles plus the single-buffered
        # resident weights stay well under the VMEM budget.
        weight_bytes = (w1p.size + w2p.size) * cbytes + (b1p.size + b2p.size) * 4
        per_row = 2 * in_dim * cbytes + 2 * out_dim * obytes
        budget = max(vmem_limit // 2 - weight_bytes, align * per_row)
        cap = max(align, (budget // max(per_row, 1)) // align * align)
        tile_m = min(cap, 512 if small_vmem else 1024)

    # Pick tm to minimize batch-padding waste and, on two-TensorCore parts
    # (v7x), give the "parallel" batch axis at least 2 grid steps to split.
    min_steps = 2 if (small_vmem and B > align) else 1
    n_steps = max(_cdiv(B, tile_m), min_steps)
    n_steps = min(n_steps, max(1, _cdiv(B, align)))
    tm = _round_up(_cdiv(B, n_steps), align)
    Bp = _round_up(B, tm)
    grid = (Bp // tm,)

    xc = x.astype(compute_dtype)
    if Bp != B:
        # Only the batch dim is ever padded (feature dims rely on the
        # "block equals full array dim" exception); padded rows are sliced off.
        xc = jnp.zeros((Bp, in_dim), compute_dtype).at[:B].set(xc)

    resident = pl.Buffered(1)  # single-buffer the grid-invariant weights/biases

    out = pl.pallas_call(
        mlp_kernel,
        out_shape=jax.ShapeDtypeStruct((Bp, out_dim), out_dtype),
        grid=grid,
        in_specs=[
            pl.BlockSpec((tm, in_dim), lambda i: (i, 0)),   # x: pipelined over batch
            pl.BlockSpec((in_dim, hid_p), lambda i: (0, 0), pipeline_mode=resident),
            pl.BlockSpec((1, hid_p), lambda i: (0, 0), pipeline_mode=resident),
            pl.BlockSpec((hid_p, out_dim), lambda i: (0, 0), pipeline_mode=resident),
            pl.BlockSpec((1, out_dim), lambda i: (0, 0), pipeline_mode=resident),
        ],
        out_specs=pl.BlockSpec((tm, out_dim), lambda i: (i, 0)),
        compiler_params=pltpu.CompilerParams(
            dimension_semantics=("parallel",),   # megacore sharding on v7x
            vmem_limit_bytes=int(vmem_limit),
        ),
    )(xc, w1p, b1p, w2p, b2p)

    if Bp != B:
        out = out[:B]
    return out

    # TODO(synk): if input_dim/hidden grow beyond a few thousand, add a trailing
    # "arbitrary" K grid axis with an f32 VMEM-scratch accumulator (P3 pattern),
    # sizing the K tile from pltpu.get_tpu_info().vmem_capacity_bytes (v7x has
    # half of v6e's VMEM).
    # TODO(synk): default compute_dtype to bfloat16 on v6e/v7x once a stable
    # chip-generation query is wired up; callers can opt in explicitly today.


if __name__ == "__main__":
    key = jax.random.PRNGKey(0)
    batch, input_dim, hidden_dim, output_dim = 8, 32, 64, 16

    kx, kp = jax.random.split(key)
    x = jax.random.normal(kx, (batch, input_dim), jnp.float32)

    # Deterministic init mimicking nn.Linear's U(-1/sqrt(fan_in), 1/sqrt(fan_in)),
    # stored as (in, out) = transpose of PyTorch's (out, in) weights.
    k1, k2, k3, k4 = jax.random.split(kp, 4)
    bound1 = 1.0 / (input_dim ** 0.5)
    bound2 = 1.0 / (hidden_dim ** 0.5)
    w1 = jax.random.uniform(k1, (input_dim, hidden_dim), jnp.float32, -bound1, bound1)
    b1 = jax.random.uniform(k2, (hidden_dim,), jnp.float32, -bound1, bound1)
    w2 = jax.random.uniform(k3, (hidden_dim, output_dim), jnp.float32, -bound2, bound2)
    b2 = jax.random.uniform(k4, (output_dim,), jnp.float32, -bound2, bound2)

    # Plain-JAX reference for semantics check.
    ref = jnp.maximum(jnp.maximum(x @ w1 + b1, 0.0) @ w2 + b2, 0.0)

    fwd = jax.jit(class_model_forward)

    # f32 path (exact match against reference).
    params_f32 = prepare_params(w1, b1, w2, b2, compute_dtype=jnp.float32)
    out = jax.block_until_ready(fwd(x, params_f32))
    assert out.shape == (batch, output_dim)
    assert jnp.allclose(out, ref, atol=1e-5, rtol=1e-5)

    # bf16 weights/activations + f32 MXU accumulation (v6e/v7x fast path);
    # accuracy loss is limited to input/weight rounding (documented trade-off).
    params_bf16 = prepare_params(w1, b1, w2, b2, compute_dtype=jnp.bfloat16)
    out_bf16 = jax.block_until_ready(fwd(x, params_bf16))
    assert out_bf16.shape == (batch, output_dim)
    assert jnp.allclose(out_bf16, ref, atol=1e-1, rtol=1e-1)

    print("KERNEL_OK")
</pallas_src>

<mosaic_0001>
module attributes {stable_mosaic.version = 11 : i64} {
  func.func @mlp_kernel(%arg0: i32, %arg1: memref<8x32xf32, #tpu.memory_space<vmem>>, %arg2: memref<32x128xf32, #tpu.memory_space<vmem>>, %arg3: memref<1x128xf32, #tpu.memory_space<vmem>>, %arg4: memref<128x16xf32, #tpu.memory_space<vmem>>, %arg5: memref<1x16xf32, #tpu.memory_space<vmem>>, %arg6: memref<8x16xf32, #tpu.memory_space<vmem>>) attributes {dimension_semantics = [#tpu.dimension_semantics<parallel>], iteration_bounds = array<i64: 1>, scalar_prefetch = 0 : i64, scratch_operands = 0 : i64, tpu.core_type = #tpu.core_type<tc>, window_params = [{transform_indices = @transform_0, window_bounds = array<i64: 8, 32>}, {pipeline_mode = #tpu.pipeline_mode<synchronous>, transform_indices = @transform_1, window_bounds = array<i64: 32, 128>}, {pipeline_mode = #tpu.pipeline_mode<synchronous>, transform_indices = @transform_2, window_bounds = array<i64: 1, 128>}, {pipeline_mode = #tpu.pipeline_mode<synchronous>, transform_indices = @transform_3, window_bounds = array<i64: 128, 16>}, {pipeline_mode = #tpu.pipeline_mode<synchronous>, transform_indices = @transform_4, window_bounds = array<i64: 1, 16>}, {transform_indices = @transform_5, window_bounds = array<i64: 8, 16>}]} {
    %c0 = arith.constant 0 : index
    %c0_0 = arith.constant 0 : index
    %0 = vector.load %arg1[%c0, %c0_0] : memref<8x32xf32, #tpu.memory_space<vmem>>, vector<8x32xf32>
    %c0_1 = arith.constant 0 : index
    %c0_2 = arith.constant 0 : index
    %1 = vector.load %arg2[%c0_1, %c0_2] : memref<32x128xf32, #tpu.memory_space<vmem>>, vector<32x128xf32>
    %cst = arith.constant dense<0.000000e+00> : vector<8x128xf32>
    %2 = tpu.matmul %0, %1, %cst {dimension_numbers = #tpu.dot_dimension_numbers<[1], [0], [0], [1], [0, 0, 1, 1], [], []>} : vector<8x32xf32>, vector<32x128xf32>, vector<8x128xf32> -> vector<8x128xf32>
    %c0_3 = arith.constant 0 : index
    %c0_4 = arith.constant 0 : index
    %3 = vector.load %arg3[%c0_3, %c0_4] : memref<1x128xf32, #tpu.memory_space<vmem>>, vector<1x128xf32>
    %4 = vector.broadcast %3 : vector<1x128xf32> to vector<8x128xf32>
    %5 = arith.addf %2, %4 : vector<8x128xf32>
    %cst_5 = arith.constant 0.000000e+00 : f32
    %6 = vector.broadcast %cst_5 : f32 to vector<8x128xf32>
    %7 = arith.maximumf %5, %6 : vector<8x128xf32>
    %c0_6 = arith.constant 0 : index
    %c0_7 = arith.constant 0 : index
    %8 = vector.load %arg4[%c0_6, %c0_7] : memref<128x16xf32, #tpu.memory_space<vmem>>, vector<128x16xf32>
    %cst_8 = arith.constant dense<0.000000e+00> : vector<8x16xf32>
    %9 = tpu.matmul %7, %8, %cst_8 {dimension_numbers = #tpu.dot_dimension_numbers<[1], [0], [0], [1], [0, 0, 1, 1], [], []>} : vector<8x128xf32>, vector<128x16xf32>, vector<8x16xf32> -> vector<8x16xf32>
    %c0_9 = arith.constant 0 : index
    %c0_10 = arith.constant 0 : index
    %10 = vector.load %arg5[%c0_9, %c0_10] : memref<1x16xf32, #tpu.memory_space<vmem>>, vector<1x16xf32>
    %11 = vector.broadcast %10 : vector<1x16xf32> to vector<8x16xf32>
    %12 = arith.addf %9, %11 : vector<8x16xf32>
    %cst_11 = arith.constant 0.000000e+00 : f32
    %13 = vector.broadcast %cst_11 : f32 to vector<8x16xf32>
    %14 = arith.maximumf %12, %13 : vector<8x16xf32>
    %c0_12 = arith.constant 0 : index
    %c0_13 = arith.constant 0 : index
    %15 = vector.load %arg6[%c0_12, %c0_13] : memref<8x16xf32, #tpu.memory_space<vmem>>, vector<8x16xf32>
    tpu.vector_store %arg6[%c0_12, %c0_13], %14 {strides = array<i32>} : memref<8x16xf32, #tpu.memory_space<vmem>>, vector<8x16xf32>,
    return
  }
  func.func @transform_0(%arg0: i32) -> (i32, i32) {
    %c0_i32 = arith.constant 0 : i32
    %c0_i32_0 = arith.constant 0 : i32
    return %arg0, %c0_i32 : i32, i32
  }
  func.func @transform_1(%arg0: i32) -> (i32, i32) {
    %c0_i32 = arith.constant 0 : i32
    %c0_i32_0 = arith.constant 0 : i32
    %c0_i32_1 = arith.constant 0 : i32
    return %c0_i32, %c0_i32_0 : i32, i32
  }
  func.func @transform_2(%arg0: i32) -> (i32, i32) {
    %c0_i32 = arith.constant 0 : i32
    %c0_i32_0 = arith.constant 0 : i32
    %c0_i32_1 = arith.constant 0 : i32
    return %c0_i32, %c0_i32_0 : i32, i32
  }
  func.func @transform_3(%arg0: i32) -> (i32, i32) {
    %c0_i32 = arith.constant 0 : i32
    %c0_i32_0 = arith.constant 0 : i32
    %c0_i32_1 = arith.constant 0 : i32
    return %c0_i32, %c0_i32_0 : i32, i32
  }
  func.func @transform_4(%arg0: i32) -> (i32, i32) {
    %c0_i32 = arith.constant 0 : i32
    %c0_i32_0 = arith.constant 0 : i32
    %c0_i32_1 = arith.constant 0 : i32
    return %c0_i32, %c0_i32_0 : i32, i32
  }
  func.func @transform_5(%arg0: i32) -> (i32, i32) {
    %c0_i32 = arith.constant 0 : i32
    %c0_i32_0 = arith.constant 0 : i32
    return %arg0, %c0_i32 : i32, i32
  }
}

</mosaic_0001>

<bundles_post_ra>
// kernel: class_model_forward.1
= control target key start
LH: loop header
LB: loop body
LE: loop exit
PB: predicated region body
PF: predicated region fallthrough
CT: control target
= control target key end

     0   :  { %vm30_vm0 = vcmask 261120   ;;  %s247_s0 = inlined_call_operand.vmem [shape: f32[8,32], index: 0, kind: input, shape index: {}]   ;;  %s248_s1 = inlined_call_operand.vmem [shape: f32[32,128], index: 1, kind: input, shape index: {}]   ;;  %s249_s2 = inlined_call_operand.vmem [shape: f32[1,128], index: 2, kind: input, shape index: {}]   ;;  %s250_s3 = inlined_call_operand.vmem [shape: f32[128,16], index: 3, kind: input, shape index: {}]   ;;  %s251_s4 = inlined_call_operand.vmem [shape: f32[1,16], index: 4, kind: input, shape index: {}]   ;;  %s252_s5 = inlined_call_operand.hbm [shape: f32[8,16], index: 5, kind: output, shape index: {}]  }
   0x1   :  { %v25_v0 = vld [vmem:[%s248_s1 + $0x18] sm:$0xff]  ;;  %v24_v1 = vld [vmem:[%s248_s1 + $0x10] sm:$0xff]  ;;  %v23_v3 = vld [vmem:[%s248_s1 + $0x8] sm:$0xff] }
   0x2   :  { %46 = vmatpush.msra.mxu0 %v25_v0  ;;  %v70_v2 = vld [vmem:[%s250_s3 + $0x78] sm:$0xff]  ;;  %v69_v4 = vld [vmem:[%s250_s3 + $0x70] sm:$0xff]  ;;  %v68_v5 = vld [vmem:[%s250_s3 + $0x68] sm:$0xff] }
   0x3   :  { %75 = vmatpush.msra.mxu1 %v70_v2  ;;  %v22_v6 = vld [vmem:[%s248_s1] sm:$0xff]  ;;  %v66_v9 = vld [vmem:[%s250_s3 + $0x58] sm:$0xff] }
   0x4   :  { %47 = vmatpush.msra.mxu0 %v24_v1  ;;  %v21_v7 = vld [vmem:[%s247_s0] sm:$0xff] }
   0x5   :  { %76 = vmatpush.msra.mxu1 %v69_v4  ;;  %v67_v8 = vld [vmem:[%s250_s3 + $0x60] sm:$0xff] }
   0x6   :  { %48 = vmatpush.msra.mxu0 %v23_v3 }
   0x7   :  { %77 = vmatpush.msra.mxu1 %v68_v5 }
   0x8   :  { %49 = vmatpush.msra.mxu0 %v22_v6 }
   0x9   :  { %10 = vsyncpa [#allocation3], 0  ;;  %114 = vmatmul.msk.f32.vlgmr.msra.gmra.mxu0 %vm30_vm0, %v21_v7  ;;  %78 = vmatpush.msra.mxu1 %v67_v8  ;;  %v65_v10 = vld [vmem:[%s250_s3 + $0x50] sm:$0xff]  ;;  %v64_v11 = vld [vmem:[%s250_s3 + $0x48] sm:$0xff]  ;;  %s144_s12 = smov [#allocation2]   ;;  %vm96_vm1 = vcmask 130048  }
   0xa   :  { %v63_v12 = vld [vmem:[%s250_s3 + $0x40] sm:$0xff]  ;;  %v62_v13 = vld [vmem:[%s250_s3 + $0x38] sm:$0xff]  ;;  %v61_v14 = vld [vmem:[%s250_s3 + $0x30] sm:$0xff]  ;;  %s103_s1 = sshll.u32 %s144_s12, 4  ;;  %s104_s1 = int_to_ptr.vmem [resolvable:$true] %s103_s1 }
   0xb   :  { %79 = vmatpush.msra.mxu1 %v66_v9  ;;  %v60_v15 = vld [vmem:[%s250_s3 + $0x28] sm:$0xff]  ;;  %v59_v16 = vld [vmem:[%s250_s3 + $0x20] sm:$0xff]  ;;  %v58_v17 = vld [vmem:[%s250_s3 + $0x18] sm:$0xff] }
   0xc   :  { %v57_v18 = vld [vmem:[%s250_s3 + $0x10] sm:$0xff]  ;;  %v56_v19 = vld [vmem:[%s250_s3 + $0x8] sm:$0xff]  ;;  %v55_v20 = vld [vmem:[%s250_s3] sm:$0xff]  ;;  %s105_s3 = sshll.u32 %s252_s5, 4  ;;  %s106_s3 = int_to_ptr.hbm [resolvable:$true] %s105_s3 }
   0xd   :  { %80 = vmatpush.msra.mxu1 %v65_v10  ;;  %v116_v21 = vld [vmem:[%s249_s2] ss:$0 sm:$0xff] }
   0xe   :  { %v117_v25 = vld [vmem:[%s251_s4] ss:$0 sm:$0xff] }
   0xf   :  { %81 = vmatpush.msra.mxu1 %v64_v11 }
  0x11   :  { %82 = vmatpush.msra.mxu1 %v63_v12 }
  0x13   :  { %83 = vmatpush.msra.mxu1 %v62_v13 }
  0x15   :  { %84 = vmatpush.msra.mxu1 %v61_v14 }
  0x17   :  { %85 = vmatpush.msra.mxu1 %v60_v15 }
  0x19   :  { %86 = vmatpush.msra.mxu1 %v59_v16 }
  0x1b   :  { %87 = vmatpush.msra.mxu1 %v58_v17 }
  0x1d   :  { %88 = vmatpush.msra.mxu1 %v57_v18 }
  0x1f   :  { %89 = vmatpush.msra.mxu1 %v56_v19 }
  0x21   :  { %90 = vmatpush.msra.mxu1 %v55_v20 }
  0x86   :  { %v51_v22 = vpop.f32.mrf.mxu0 }
  0x87   :  { %v52_v23 = vadd.f32 %v116_v21, %v51_v22 }
  0x89   :  { %v54_v24 = vmax.f32 %v52_v23, 0.0 }
  0x8b   :  { %91 = vmatmul.f32.vlgmr.msra.gmra.mxu1 %v54_v24 }
 0x108   :  { %v92_v26 = vpop.f32.mrf.mxu1 }
 0x109   :  { %v93_v27 = vadd.f32 %v117_v25, %v92_v26 }
 0x10b   :  { %v95_v28 = vmax.f32 %v93_v27, 0.0 }
 0x10d   :  { %97 = vst.msk [vmem:[#allocation2] sm:$0xff] %vm96_vm1, %v95_v28 }
 0x10e   :  { %108 = dma.vmem_to_hbm [thread:$0]  %s104_s1, 128, %s106_s3, [#allocation3]  }
 0x10f   :  { %142 = dma.done.wait [#allocation3], 128  }
 0x110   :  { %143 = vsyncadd [#allocation3], 4294967168 }
 0x111   :  { %113 = vsyncpa [#allocation3], 1 }

</bundles_post_ra>
